<compile_context>
chip_gen: v6e
topology: v6e:2x2x1
jax: 0.10.0
libtpu: 0.0.40
codegen_flags: <defaults>
</compile_context>

<pallas_src>
import functools

import jax
import jax.numpy as jnp
from jax.experimental import pallas as pl
from jax.experimental.pallas import tpu as pltpu


def add_kernel(a_ref, b_ref, o_ref):
    o_ref[...] = a_ref[...] + b_ref[...]


@functools.partial(jax.jit)
def pallas_add(a, b):
    assert a.shape == b.shape and a.dtype == b.dtype
    orig_shape = a.shape
    D = orig_shape[-1]
    # Lane-dense 2D view: (rows, lanes) with lanes a multiple of 128.
    # Reshape of a contiguous array is free (and fused under jit anyway).
    a2 = a.reshape(-1, D)
    b2 = b.reshape(-1, D)
    rows, lanes = a2.shape
    itemsize = jnp.dtype(a.dtype).itemsize

    spec = pl.BlockSpec((rows, lanes), lambda: (0, 0))
    out2 = pl.pallas_call(
        add_kernel,
        out_shape=jax.ShapeDtypeStruct((rows, lanes), a.dtype),
        in_specs=[spec, spec],
        out_specs=spec,
        compiler_params=pltpu.CompilerParams(
            # Let XLA fuse producers of both operands into the Pallas inputs.
            allow_input_fusion=[True, True],
        ),
        cost_estimate=pl.CostEstimate(
            flops=rows * lanes,
            transcendentals=0,
            bytes_accessed=3 * rows * lanes * itemsize,
        ),
    )(a2, b2)
    return out2.reshape(orig_shape)


if __name__ == "__main__":
    key = jax.random.PRNGKey(0)
    k1, k2 = jax.random.split(key)
    # Shapes consistent with the module's forward: (1, 384, 256)
    x489 = jax.random.normal(k1, (1, 384, 256), dtype=jnp.float32)
    x485 = jax.random.normal(k2, (1, 384, 256), dtype=jnp.float32)

    ref = x489 + x485

    out = pallas_add(x489, x485)
    jax.block_until_ready(out)

    assert out.shape == ref.shape and out.dtype == ref.dtype
    assert jnp.allclose(out, ref), "mismatch vs reference"
    print("KERNEL_OK")
</pallas_src>

<mosaic_0001>
module attributes {stable_mosaic.version = 11 : i64} {
  func.func @add_kernel(%arg0: memref<384x256xf32, #tpu.memory_space<vmem>>, %arg1: memref<384x256xf32, #tpu.memory_space<vmem>>, %arg2: memref<384x256xf32, #tpu.memory_space<vmem>>) attributes {dimension_semantics = [], scalar_prefetch = 0 : i64, scratch_operands = 0 : i64, tpu.core_type = #tpu.core_type<tc>} {
    %c0 = arith.constant 0 : index
    %c0_0 = arith.constant 0 : index
    %0 = vector.load %arg0[%c0, %c0_0] : memref<384x256xf32, #tpu.memory_space<vmem>>, vector<384x256xf32>
    %c0_1 = arith.constant 0 : index
    %c0_2 = arith.constant 0 : index
    %1 = vector.load %arg1[%c0_1, %c0_2] : memref<384x256xf32, #tpu.memory_space<vmem>>, vector<384x256xf32>
    %2 = arith.addf %0, %1 : vector<384x256xf32>
    %c0_3 = arith.constant 0 : index
    %c0_4 = arith.constant 0 : index
    %3 = vector.load %arg2[%c0_3, %c0_4] : memref<384x256xf32, #tpu.memory_space<vmem>>, vector<384x256xf32>
    tpu.vector_store %arg2[%c0_3, %c0_4], %2 {strides = array<i32>} : memref<384x256xf32, #tpu.memory_space<vmem>>, vector<384x256xf32>,
    return
  }
}

</mosaic_0001>

<bundles_post_ra>
// kernel: pallas_add.2
= control target key start
LH: loop header
LB: loop body
LE: loop exit
PB: predicated region body
PF: predicated region fallthrough
CT: control target
= control target key end

     0   :  { %7 = vsyncpa [#allocation3], 0  ;;  %s2235_s0 = inlined_call_operand.vmem [shape: f32[1,384,256], index: 0, kind: input, shape index: {}]   ;;  %s2236_s1 = inlined_call_operand.hbm [shape: f32[1,384,256], index: 1, kind: input, shape index: {}]   ;;  %s2237_s2 = inlined_call_operand.hbm [shape: f32[384,256], index: 2, kind: output, shape index: {}]  }
   0x1   :  { %8 = vsyncpa [#allocation4], 0  ;;  %s1718_s9 = smov [#allocation2]  }
   0x2   :  { %s14_s10 = sshll.u32 %s1718_s9, 4  ;;  %s15_s10 = int_to_ptr.vmem [resolvable:$true] %s14_s10 }
   0x3   :  { %s1682_s11 = scalar_lea.vmem %s15_s10, 12288  ;;  %p1687_p1 = scmp.lt.s32.totalorder %s15_s10, %s15_s10 }
   0x4   :  { %p1683_p0 = scmp.ne.s32.totalorder %s15_s10, %s1682_s11  ;;  %p1688_p2 = scmp.lt.s32.totalorder %s1682_s11, %s1682_s11 }
   0x6   :  { %p1689_p3 = por %p1688_p2, %p1687_p1 }
   0x8   :  { %p1690_p4 = pnand %p1689_p3, %p1683_p0 }
   0xa   :  { %1693 = shalt.err (!%p1690_p4)
}
   0xb   :  { %s1719_s12 = smov 256   ;;  %s1720_s13 = smov 16  }
   0xc   :  { %20 = dma.hbm_to_vmem [thread:$0]  %s2236_s1, 12288, %s15_s10, [#allocation3], %s1719_s12, %s1719_s12, %s1720_s13  }
   0xd   :  { %1714 = dma.done.wait [#allocation3], 12288  }
   0xe   :  { %1715 = vsyncadd [#allocation3], 4294955008  ;;  %v26_v0 = vld [vmem:[#allocation2] sm:$0xff]  ;;  %v31_v1 = vld [vmem:[#allocation2 + $0x8] sm:$0xff]  ;;  %s1721_s5 = smov [#allocation5]  }
   0xf   :  { %v37_v2 = vld [vmem:[#allocation2 + $0x10] sm:$0xff]  ;;  %v43_v3 = vld [vmem:[#allocation2 + $0x18] sm:$0xff]  ;;  %v49_v4 = vld [vmem:[#allocation2 + $0x20] sm:$0xff]  ;;  %s1563_s6 = sshll.u32 %s1721_s5, 4  ;;  %s1564_s6 = int_to_ptr.vmem [resolvable:$true] %s1563_s6 }
  0x10   :  { %v55_v5 = vld [vmem:[#allocation2 + $0x28] sm:$0xff]  ;;  %v61_v6 = vld [vmem:[#allocation2 + $0x30] sm:$0xff]  ;;  %v67_v7 = vld [vmem:[#allocation2 + $0x38] sm:$0xff]  ;;  %p1699_p6 = scmp.lt.s32.totalorder %s1564_s6, %s1564_s6 }
  0x11   :  { %v73_v8 = vld [vmem:[#allocation2 + $0x40] sm:$0xff]  ;;  %v79_v9 = vld [vmem:[#allocation2 + $0x48] sm:$0xff]  ;;  %v85_v10 = vld [vmem:[#allocation2 + $0x50] sm:$0xff] }
  0x12   :  { %v91_v11 = vld [vmem:[#allocation2 + $0x58] sm:$0xff]  ;;  %v97_v12 = vld [vmem:[#allocation2 + $0x60] sm:$0xff]  ;;  %v103_v13 = vld [vmem:[#allocation2 + $0x68] sm:$0xff] }
  0x13   :  { %v109_v14 = vld [vmem:[#allocation2 + $0x70] sm:$0xff]  ;;  %v600_v15 = vld [vmem:[%s2235_s0] sm:$0xff]  ;;  %v1575_v16 = vld [vmem:[%s2235_s0 + $0x8] sm:$0xff] }
  0x14   :  { %v1576_v17 = vld [vmem:[%s2235_s0 + $0x10] sm:$0xff]  ;;  %v115_v18 = vld [vmem:[#allocation2 + $0x78] sm:$0xff]  ;;  %v121_v19 = vld [vmem:[#allocation2 + $0x80] sm:$0xff]  ;;  %v1366_v24 = vadd.f32 %v600_v15, %v26_v0  ;;  %v1367_v25 = vadd.f32 %v1575_v16, %v31_v1 }
  0x15   :  { %v127_v20 = vld [vmem:[#allocation2 + $0x88] sm:$0xff]  ;;  %v1577_v21 = vld [vmem:[%s2235_s0 + $0x18] sm:$0xff]  ;;  %v1578_v22 = vld [vmem:[%s2235_s0 + $0x20] sm:$0xff]  ;;  %v1368_v26 = vadd.f32 %v1576_v17, %v37_v2 }
  0x16   :  { %v1579_v23 = vld [vmem:[%s2235_s0 + $0x28] sm:$0xff]  ;;  %v1761_v27 = vld [vmem:[#allocation2 + $0x90] sm:$0xff]  ;;  %v1763_v28 = vld [vmem:[#allocation2 + $0x98] sm:$0xff]  ;;  %v1369_v33 = vadd.f32 %v1577_v21, %v43_v3  ;;  %v1370_v34 = vadd.f32 %v1578_v22, %v49_v4  ;;  %1462 = vst [vmem:[#allocation5] sm:$0xff] %v1366_v24 }
  0x17   :  { %v1765_v29 = vld [vmem:[#allocation2 + $0xa0] sm:$0xff]  ;;  %v1580_v30 = vld [vmem:[%s2235_s0 + $0x30] sm:$0xff]  ;;  %v1581_v31 = vld [vmem:[%s2235_s0 + $0x38] sm:$0xff]  ;;  %v1371_v35 = vadd.f32 %v1579_v23, %v55_v5  ;;  %1463 = vst [vmem:[#allocation5 + $0x8] sm:$0xff] %v1367_v25 }
  0x18   :  { %v1582_v32 = vld [vmem:[%s2235_s0 + $0x40] sm:$0xff]  ;;  %v1776_v36 = vld [vmem:[#allocation2 + $0xa8] sm:$0xff]  ;;  %v1778_v37 = vld [vmem:[#allocation2 + $0xb0] sm:$0xff]  ;;  %v1372_v42 = vadd.f32 %v1580_v30, %v61_v6  ;;  %v1373_v43 = vadd.f32 %v1581_v31, %v67_v7  ;;  %1464 = vst [vmem:[#allocation5 + $0x10] sm:$0xff] %v1368_v26 }
  0x19   :  { %v1780_v38 = vld [vmem:[#allocation2 + $0xb8] sm:$0xff]  ;;  %v1583_v39 = vld [vmem:[%s2235_s0 + $0x48] sm:$0xff]  ;;  %v1584_v40 = vld [vmem:[%s2235_s0 + $0x50] sm:$0xff]  ;;  %v1374_v44 = vadd.f32 %v1582_v32, %v73_v8  ;;  %1465 = vst [vmem:[#allocation5 + $0x18] sm:$0xff] %v1369_v33 }
  0x1a   :  { %v1585_v41 = vld [vmem:[%s2235_s0 + $0x58] sm:$0xff]  ;;  %v1791_v45 = vld [vmem:[#allocation2 + $0xc0] sm:$0xff]  ;;  %v1793_v46 = vld [vmem:[#allocation2 + $0xc8] sm:$0xff]  ;;  %v1375_v51 = vadd.f32 %v1583_v39, %v79_v9  ;;  %v1376_v52 = vadd.f32 %v1584_v40, %v85_v10  ;;  %1466 = vst [vmem:[#allocation5 + $0x20] sm:$0xff] %v1370_v34 }
  0x1b   :  { %v1795_v47 = vld [vmem:[#allocation2 + $0xd0] sm:$0xff]  ;;  %v1586_v48 = vld [vmem:[%s2235_s0 + $0x60] sm:$0xff]  ;;  %v1587_v49 = vld [vmem:[%s2235_s0 + $0x68] sm:$0xff]  ;;  %v1377_v53 = vadd.f32 %v1585_v41, %v91_v11  ;;  %1467 = vst [vmem:[#allocation5 + $0x28] sm:$0xff] %v1371_v35 }
  0x1c   :  { %v1588_v50 = vld [vmem:[%s2235_s0 + $0x70] sm:$0xff]  ;;  %v1806_v54 = vld [vmem:[#allocation2 + $0xd8] sm:$0xff]  ;;  %v1808_v55 = vld [vmem:[#allocation2 + $0xe0] sm:$0xff]  ;;  %v1378_v60 = vadd.f32 %v1586_v48, %v97_v12  ;;  %v1379_v61 = vadd.f32 %v1587_v49, %v103_v13  ;;  %1468 = vst [vmem:[#allocation5 + $0x30] sm:$0xff] %v1372_v42 }
  0x1d   :  { %v1810_v56 = vld [vmem:[#allocation2 + $0xe8] sm:$0xff]  ;;  %v1589_v57 = vld [vmem:[%s2235_s0 + $0x78] sm:$0xff]  ;;  %v1590_v58 = vld [vmem:[%s2235_s0 + $0x80] sm:$0xff]  ;;  %v1380_v62 = vadd.f32 %v1588_v50, %v109_v14  ;;  %1469 = vst [vmem:[#allocation5 + $0x38] sm:$0xff] %v1373_v43 }
  0x1e   :  { %v1591_v59 = vld [vmem:[%s2235_s0 + $0x88] sm:$0xff]  ;;  %1470 = vst [vmem:[#allocation5 + $0x40] sm:$0xff] %v1374_v44  ;;  %v1821_v63 = vld [vmem:[#allocation2 + $0xf0] sm:$0xff]  ;;  %v1823_v0 = vld [vmem:[#allocation2 + $0xf8] sm:$0xff]  ;;  %v1381_v5 = vadd.f32 %v1589_v57, %v115_v18  ;;  %v1382_v6 = vadd.f32 %v1590_v58, %v121_v19 }
  0x1f   :  { %v1825_v1 = vld [vmem:[#allocation2 + $0x100] sm:$0xff]  ;;  %v1592_v2 = vld [vmem:[%s2235_s0 + $0x90] sm:$0xff]  ;;  %v1593_v3 = vld [vmem:[%s2235_s0 + $0x98] sm:$0xff]  ;;  %v1383_v7 = vadd.f32 %v1591_v59, %v127_v20  ;;  %1471 = vst [vmem:[#allocation5 + $0x48] sm:$0xff] %v1375_v51 }
  0x20   :  { %v1594_v4 = vld [vmem:[%s2235_s0 + $0xa0] sm:$0xff]  ;;  %1472 = vst [vmem:[#allocation5 + $0x50] sm:$0xff] %v1376_v52  ;;  %1473 = vst [vmem:[#allocation5 + $0x58] sm:$0xff] %v1377_v53  ;;  %v1836_v8 = vld [vmem:[#allocation2 + $0x108] sm:$0xff]  ;;  %v1384_v14 = vadd.f32 %v1592_v2, %v1761_v27  ;;  %v1385_v15 = vadd.f32 %v1593_v3, %v1763_v28 }
  0x21   :  { %v1838_v9 = vld [vmem:[#allocation2 + $0x110] sm:$0xff]  ;;  %v1840_v10 = vld [vmem:[#allocation2 + $0x118] sm:$0xff]  ;;  %v1595_v11 = vld [vmem:[%s2235_s0 + $0xa8] sm:$0xff]  ;;  %v1386_v16 = vadd.f32 %v1594_v4, %v1765_v29  ;;  %1474 = vst [vmem:[#allocation5 + $0x60] sm:$0xff] %v1378_v60 }
  0x22   :  { %v1596_v12 = vld [vmem:[%s2235_s0 + $0xb0] sm:$0xff]  ;;  %v1597_v13 = vld [vmem:[%s2235_s0 + $0xb8] sm:$0xff]  ;;  %1475 = vst [vmem:[#allocation5 + $0x68] sm:$0xff] %v1379_v61  ;;  %1476 = vst [vmem:[#allocation5 + $0x70] sm:$0xff] %v1380_v62  ;;  %v1387_v23 = vadd.f32 %v1595_v11, %v1776_v36 }
  0x23   :  { %v1854_v17 = vld [vmem:[#allocation2 + $0x120] sm:$0xff]  ;;  %v1856_v18 = vld [vmem:[#allocation2 + $0x128] sm:$0xff]  ;;  %v1858_v19 = vld [vmem:[#allocation2 + $0x130] sm:$0xff]  ;;  %v1388_v24 = vadd.f32 %v1596_v12, %v1778_v37  ;;  %v1389_v25 = vadd.f32 %v1597_v13, %v1780_v38  ;;  %1477 = vst [vmem:[#allocation5 + $0x78] sm:$0xff] %v1381_v5 }
  0x24   :  { %v1598_v20 = vld [vmem:[%s2235_s0 + $0xc0] sm:$0xff]  ;;  %v1599_v21 = vld [vmem:[%s2235_s0 + $0xc8] sm:$0xff]  ;;  %v1600_v22 = vld [vmem:[%s2235_s0 + $0xd0] sm:$0xff]  ;;  %1478 = vst [vmem:[#allocation5 + $0x80] sm:$0xff] %v1382_v6 }
  0x25   :  { %1479 = vst [vmem:[#allocation5 + $0x88] sm:$0xff] %v1383_v7  ;;  %v1872_v26 = vld [vmem:[#allocation2 + $0x138] sm:$0xff]  ;;  %v1874_v27 = vld [vmem:[#allocation2 + $0x140] sm:$0xff]  ;;  %v1876_v28 = vld [vmem:[#allocation2 + $0x148] sm:$0xff]  ;;  %v1390_v32 = vadd.f32 %v1598_v20, %v1791_v45  ;;  %v1391_v33 = vadd.f32 %v1599_v21, %v1793_v46  ;;  %v1392_v34 = vadd.f32 %v1600_v22, %v1795_v47 }
  0x26   :  { %v1601_v29 = vld [vmem:[%s2235_s0 + $0xd8] sm:$0xff]  ;;  %v1602_v30 = vld [vmem:[%s2235_s0 + $0xe0] sm:$0xff]  ;;  %v1603_v31 = vld [vmem:[%s2235_s0 + $0xe8] sm:$0xff]  ;;  %1480 = vst [vmem:[#allocation5 + $0x90] sm:$0xff] %v1384_v14 }
  0x27   :  { %1481 = vst [vmem:[#allocation5 + $0x98] sm:$0xff] %v1385_v15  ;;  %1482 = vst [vmem:[#allocation5 + $0xa0] sm:$0xff] %v1386_v16  ;;  %v1890_v35 = vld [vmem:[#allocation2 + $0x150] sm:$0xff]  ;;  %v1892_v36 = vld [vmem:[#allocation2 + $0x158] sm:$0xff]  ;;  %v1393_v41 = vadd.f32 %v1601_v29, %v1806_v54  ;;  %v1394_v42 = vadd.f32 %v1602_v30, %v1808_v55  ;;  %v1395_v43 = vadd.f32 %v1603_v31, %v1810_v56 }
  0x28   :  { %v1894_v37 = vld [vmem:[#allocation2 + $0x160] sm:$0xff]  ;;  %v1604_v38 = vld [vmem:[%s2235_s0 + $0xf0] sm:$0xff]  ;;  %v1605_v39 = vld [vmem:[%s2235_s0 + $0xf8] sm:$0xff]  ;;  %1483 = vst [vmem:[#allocation5 + $0xa8] sm:$0xff] %v1387_v23 }
  0x29   :  { %v1606_v40 = vld [vmem:[%s2235_s0 + $0x100] sm:$0xff]  ;;  %1484 = vst [vmem:[#allocation5 + $0xb0] sm:$0xff] %v1388_v24  ;;  %1485 = vst [vmem:[#allocation5 + $0xb8] sm:$0xff] %v1389_v25  ;;  %v1908_v44 = vld [vmem:[#allocation2 + $0x168] sm:$0xff]  ;;  %v1396_v50 = vadd.f32 %v1604_v38, %v1821_v63  ;;  %v1397_v51 = vadd.f32 %v1605_v39, %v1823_v0 }
  0x2a   :  { %v1910_v45 = vld [vmem:[#allocation2 + $0x170] sm:$0xff]  ;;  %v1912_v46 = vld [vmem:[#allocation2 + $0x178] sm:$0xff]  ;;  %v1607_v47 = vld [vmem:[%s2235_s0 + $0x108] sm:$0xff]  ;;  %v1398_v52 = vadd.f32 %v1606_v40, %v1825_v1  ;;  %1486 = vst [vmem:[#allocation5 + $0xc0] sm:$0xff] %v1390_v32 }
  0x2b   :  { %v1608_v48 = vld [vmem:[%s2235_s0 + $0x110] sm:$0xff]  ;;  %v1609_v49 = vld [vmem:[%s2235_s0 + $0x118] sm:$0xff]  ;;  %1487 = vst [vmem:[#allocation5 + $0xc8] sm:$0xff] %v1391_v33  ;;  %1488 = vst [vmem:[#allocation5 + $0xd0] sm:$0xff] %v1392_v34  ;;  %v1399_v59 = vadd.f32 %v1607_v47, %v1836_v8 }
  0x2c   :  { %v1926_v53 = vld [vmem:[#allocation2 + $0x180] sm:$0xff]  ;;  %v1928_v54 = vld [vmem:[#allocation2 + $0x188] sm:$0xff]  ;;  %v1930_v55 = vld [vmem:[#allocation2 + $0x190] sm:$0xff]  ;;  %v1400_v60 = vadd.f32 %v1608_v48, %v1838_v9  ;;  %v1401_v61 = vadd.f32 %v1609_v49, %v1840_v10  ;;  %1489 = vst [vmem:[#allocation5 + $0xd8] sm:$0xff] %v1393_v41 }
  0x2d   :  { %v1610_v56 = vld [vmem:[%s2235_s0 + $0x120] sm:$0xff]  ;;  %v1611_v57 = vld [vmem:[%s2235_s0 + $0x128] sm:$0xff]  ;;  %v1612_v58 = vld [vmem:[%s2235_s0 + $0x130] sm:$0xff]  ;;  %1490 = vst [vmem:[#allocation5 + $0xe0] sm:$0xff] %v1394_v42 }
  0x2e   :  { %1491 = vst [vmem:[#allocation5 + $0xe8] sm:$0xff] %v1395_v43  ;;  %v1944_v62 = vld [vmem:[#allocation2 + $0x198] sm:$0xff]  ;;  %v1946_v63 = vld [vmem:[#allocation2 + $0x1a0] sm:$0xff]  ;;  %v1948_v0 = vld [vmem:[#allocation2 + $0x1a8] sm:$0xff]  ;;  %v1402_v4 = vadd.f32 %v1610_v56, %v1854_v17  ;;  %v1403_v5 = vadd.f32 %v1611_v57, %v1856_v18  ;;  %v1404_v6 = vadd.f32 %v1612_v58, %v1858_v19 }
  0x2f   :  { %v1613_v1 = vld [vmem:[%s2235_s0 + $0x138] sm:$0xff]  ;;  %v1614_v2 = vld [vmem:[%s2235_s0 + $0x140] sm:$0xff]  ;;  %v1615_v3 = vld [vmem:[%s2235_s0 + $0x148] sm:$0xff]  ;;  %1492 = vst [vmem:[#allocation5 + $0xf0] sm:$0xff] %v1396_v50 }
  0x30   :  { %1493 = vst [vmem:[#allocation5 + $0xf8] sm:$0xff] %v1397_v51  ;;  %1494 = vst [vmem:[#allocation5 + $0x100] sm:$0xff] %v1398_v52  ;;  %v1962_v7 = vld [vmem:[#allocation2 + $0x1b0] sm:$0xff]  ;;  %v1964_v8 = vld [vmem:[#allocation2 + $0x1b8] sm:$0xff]  ;;  %v1405_v13 = vadd.f32 %v1613_v1, %v1872_v26  ;;  %v1406_v14 = vadd.f32 %v1614_v2, %v1874_v27  ;;  %v1407_v15 = vadd.f32 %v1615_v3, %v1876_v28 }
  0x31   :  { %v1966_v9 = vld [vmem:[#allocation2 + $0x1c0] sm:$0xff]  ;;  %v1616_v10 = vld [vmem:[%s2235_s0 + $0x150] sm:$0xff]  ;;  %v1617_v11 = vld [vmem:[%s2235_s0 + $0x158] sm:$0xff]  ;;  %1495 = vst [vmem:[#allocation5 + $0x108] sm:$0xff] %v1399_v59 }
  0x32   :  { %v1618_v12 = vld [vmem:[%s2235_s0 + $0x160] sm:$0xff]  ;;  %1496 = vst [vmem:[#allocation5 + $0x110] sm:$0xff] %v1400_v60  ;;  %1497 = vst [vmem:[#allocation5 + $0x118] sm:$0xff] %v1401_v61  ;;  %v1980_v16 = vld [vmem:[#allocation2 + $0x1c8] sm:$0xff]  ;;  %v1408_v22 = vadd.f32 %v1616_v10, %v1890_v35  ;;  %v1409_v23 = vadd.f32 %v1617_v11, %v1892_v36 }
  0x33   :  { %v1982_v17 = vld [vmem:[#allocation2 + $0x1d0] sm:$0xff]  ;;  %v1984_v18 = vld [vmem:[#allocation2 + $0x1d8] sm:$0xff]  ;;  %v1619_v19 = vld [vmem:[%s2235_s0 + $0x168] sm:$0xff]  ;;  %v1410_v24 = vadd.f32 %v1618_v12, %v1894_v37  ;;  %1498 = vst [vmem:[#allocation5 + $0x120] sm:$0xff] %v1402_v4 }
  0x34   :  { %v1620_v20 = vld [vmem:[%s2235_s0 + $0x170] sm:$0xff]  ;;  %v1621_v21 = vld [vmem:[%s2235_s0 + $0x178] sm:$0xff]  ;;  %1499 = vst [vmem:[#allocation5 + $0x128] sm:$0xff] %v1403_v5  ;;  %1500 = vst [vmem:[#allocation5 + $0x130] sm:$0xff] %v1404_v6  ;;  %v1411_v31 = vadd.f32 %v1619_v19, %v1908_v44 }
  0x35   :  { %v1998_v25 = vld [vmem:[#allocation2 + $0x1e0] sm:$0xff]  ;;  %v2000_v26 = vld [vmem:[#allocation2 + $0x1e8] sm:$0xff]  ;;  %v2002_v27 = vld [vmem:[#allocation2 + $0x1f0] sm:$0xff]  ;;  %v1412_v32 = vadd.f32 %v1620_v20, %v1910_v45  ;;  %v1413_v33 = vadd.f32 %v1621_v21, %v1912_v46  ;;  %1501 = vst [vmem:[#allocation5 + $0x138] sm:$0xff] %v1405_v13 }
  0x36   :  { %v1622_v28 = vld [vmem:[%s2235_s0 + $0x180] sm:$0xff]  ;;  %v1623_v29 = vld [vmem:[%s2235_s0 + $0x188] sm:$0xff]  ;;  %v1624_v30 = vld [vmem:[%s2235_s0 + $0x190] sm:$0xff]  ;;  %1502 = vst [vmem:[#allocation5 + $0x140] sm:$0xff] %v1406_v14 }
  0x37   :  { %1503 = vst [vmem:[#allocation5 + $0x148] sm:$0xff] %v1407_v15  ;;  %v2016_v34 = vld [vmem:[#allocation2 + $0x1f8] sm:$0xff]  ;;  %v2018_v35 = vld [vmem:[#allocation2 + $0x200] sm:$0xff]  ;;  %v2020_v36 = vld [vmem:[#allocation2 + $0x208] sm:$0xff]  ;;  %v1414_v40 = vadd.f32 %v1622_v28, %v1926_v53  ;;  %v1415_v41 = vadd.f32 %v1623_v29, %v1928_v54  ;;  %v1416_v42 = vadd.f32 %v1624_v30, %v1930_v55 }
  0x38   :  { %v1625_v37 = vld [vmem:[%s2235_s0 + $0x198] sm:$0xff]  ;;  %v1626_v38 = vld [vmem:[%s2235_s0 + $0x1a0] sm:$0xff]  ;;  %v1627_v39 = vld [vmem:[%s2235_s0 + $0x1a8] sm:$0xff]  ;;  %1504 = vst [vmem:[#allocation5 + $0x150] sm:$0xff] %v1408_v22 }
  0x39   :  { %1505 = vst [vmem:[#allocation5 + $0x158] sm:$0xff] %v1409_v23  ;;  %1506 = vst [vmem:[#allocation5 + $0x160] sm:$0xff] %v1410_v24  ;;  %v2034_v43 = vld [vmem:[#allocation2 + $0x210] sm:$0xff]  ;;  %v2036_v44 = vld [vmem:[#allocation2 + $0x218] sm:$0xff]  ;;  %v1417_v49 = vadd.f32 %v1625_v37, %v1944_v62  ;;  %v1418_v50 = vadd.f32 %v1626_v38, %v1946_v63  ;;  %v1419_v51 = vadd.f32 %v1627_v39, %v1948_v0 }
  0x3a   :  { %v2038_v45 = vld [vmem:[#allocation2 + $0x220] sm:$0xff]  ;;  %v1628_v46 = vld [vmem:[%s2235_s0 + $0x1b0] sm:$0xff]  ;;  %v1629_v47 = vld [vmem:[%s2235_s0 + $0x1b8] sm:$0xff]  ;;  %1507 = vst [vmem:[#allocation5 + $0x168] sm:$0xff] %v1411_v31 }
  0x3b   :  { %v1630_v48 = vld [vmem:[%s2235_s0 + $0x1c0] sm:$0xff]  ;;  %1508 = vst [vmem:[#allocation5 + $0x170] sm:$0xff] %v1412_v32  ;;  %1509 = vst [vmem:[#allocation5 + $0x178] sm:$0xff] %v1413_v33  ;;  %v2052_v52 = vld [vmem:[#allocation2 + $0x228] sm:$0xff]  ;;  %v1420_v58 = vadd.f32 %v1628_v46, %v1962_v7  ;;  %v1421_v59 = vadd.f32 %v1629_v47, %v1964_v8 }
  0x3c   :  { %v2054_v53 = vld [vmem:[#allocation2 + $0x230] sm:$0xff]  ;;  %v2056_v54 = vld [vmem:[#allocation2 + $0x238] sm:$0xff]  ;;  %v1631_v55 = vld [vmem:[%s2235_s0 + $0x1c8] sm:$0xff]  ;;  %v1422_v60 = vadd.f32 %v1630_v48, %v1966_v9  ;;  %1510 = vst [vmem:[#allocation5 + $0x180] sm:$0xff] %v1414_v40 }
  0x3d   :  { %v1632_v56 = vld [vmem:[%s2235_s0 + $0x1d0] sm:$0xff]  ;;  %v1633_v57 = vld [vmem:[%s2235_s0 + $0x1d8] sm:$0xff]  ;;  %1511 = vst [vmem:[#allocation5 + $0x188] sm:$0xff] %v1415_v41  ;;  %1512 = vst [vmem:[#allocation5 + $0x190] sm:$0xff] %v1416_v42  ;;  %v1423_v3 = vadd.f32 %v1631_v55, %v1980_v16 }
  0x3e   :  { %v2070_v61 = vld [vmem:[#allocation2 + $0x240] sm:$0xff]  ;;  %v2072_v62 = vld [vmem:[#allocation2 + $0x248] sm:$0xff]  ;;  %v2074_v63 = vld [vmem:[#allocation2 + $0x250] sm:$0xff]  ;;  %v1424_v4 = vadd.f32 %v1632_v56, %v1982_v17  ;;  %v1425_v5 = vadd.f32 %v1633_v57, %v1984_v18  ;;  %1513 = vst [vmem:[#allocation5 + $0x198] sm:$0xff] %v1417_v49 }
  0x3f   :  { %v1634_v0 = vld [vmem:[%s2235_s0 + $0x1e0] sm:$0xff]  ;;  %v1635_v1 = vld [vmem:[%s2235_s0 + $0x1e8] sm:$0xff]  ;;  %v1636_v2 = vld [vmem:[%s2235_s0 + $0x1f0] sm:$0xff]  ;;  %1514 = vst [vmem:[#allocation5 + $0x1a0] sm:$0xff] %v1418_v50 }
  0x40   :  { %1515 = vst [vmem:[#allocation5 + $0x1a8] sm:$0xff] %v1419_v51  ;;  %v2088_v6 = vld [vmem:[#allocation2 + $0x258] sm:$0xff]  ;;  %v2090_v7 = vld [vmem:[#allocation2 + $0x260] sm:$0xff]  ;;  %v2092_v8 = vld [vmem:[#allocation2 + $0x268] sm:$0xff]  ;;  %v1426_v12 = vadd.f32 %v1634_v0, %v1998_v25  ;;  %v1427_v13 = vadd.f32 %v1635_v1, %v2000_v26  ;;  %v1428_v14 = vadd.f32 %v1636_v2, %v2002_v27 }
  0x41   :  { %v1637_v9 = vld [vmem:[%s2235_s0 + $0x1f8] sm:$0xff]  ;;  %v1638_v10 = vld [vmem:[%s2235_s0 + $0x200] sm:$0xff]  ;;  %v1639_v11 = vld [vmem:[%s2235_s0 + $0x208] sm:$0xff]  ;;  %1516 = vst [vmem:[#allocation5 + $0x1b0] sm:$0xff] %v1420_v58 }
  0x42   :  { %1517 = vst [vmem:[#allocation5 + $0x1b8] sm:$0xff] %v1421_v59  ;;  %1518 = vst [vmem:[#allocation5 + $0x1c0] sm:$0xff] %v1422_v60  ;;  %v2106_v15 = vld [vmem:[#allocation2 + $0x270] sm:$0xff]  ;;  %v2108_v16 = vld [vmem:[#allocation2 + $0x278] sm:$0xff]  ;;  %v1429_v21 = vadd.f32 %v1637_v9, %v2016_v34  ;;  %v1430_v22 = vadd.f32 %v1638_v10, %v2018_v35  ;;  %v1431_v23 = vadd.f32 %v1639_v11, %v2020_v36 }
  0x43   :  { %v2110_v17 = vld [vmem:[#allocation2 + $0x280] sm:$0xff]  ;;  %v1640_v18 = vld [vmem:[%s2235_s0 + $0x210] sm:$0xff]  ;;  %v1641_v19 = vld [vmem:[%s2235_s0 + $0x218] sm:$0xff]  ;;  %1519 = vst [vmem:[#allocation5 + $0x1c8] sm:$0xff] %v1423_v3 }
  0x44   :  { %v1642_v20 = vld [vmem:[%s2235_s0 + $0x220] sm:$0xff]  ;;  %1520 = vst [vmem:[#allocation5 + $0x1d0] sm:$0xff] %v1424_v4  ;;  %1521 = vst [vmem:[#allocation5 + $0x1d8] sm:$0xff] %v1425_v5  ;;  %v2124_v24 = vld [vmem:[#allocation2 + $0x288] sm:$0xff]  ;;  %v1432_v30 = vadd.f32 %v1640_v18, %v2034_v43  ;;  %v1433_v31 = vadd.f32 %v1641_v19, %v2036_v44 }
  0x45   :  { %v2126_v25 = vld [vmem:[#allocation2 + $0x290] sm:$0xff]  ;;  %v2128_v26 = vld [vmem:[#allocation2 + $0x298] sm:$0xff]  ;;  %v1643_v27 = vld [vmem:[%s2235_s0 + $0x228] sm:$0xff]  ;;  %v1434_v32 = vadd.f32 %v1642_v20, %v2038_v45  ;;  %1522 = vst [vmem:[#allocation5 + $0x1e0] sm:$0xff] %v1426_v12 }
  0x46   :  { %v1644_v28 = vld [vmem:[%s2235_s0 + $0x230] sm:$0xff]  ;;  %v1645_v29 = vld [vmem:[%s2235_s0 + $0x238] sm:$0xff]  ;;  %1523 = vst [vmem:[#allocation5 + $0x1e8] sm:$0xff] %v1427_v13  ;;  %1524 = vst [vmem:[#allocation5 + $0x1f0] sm:$0xff] %v1428_v14  ;;  %v1435_v39 = vadd.f32 %v1643_v27, %v2052_v52 }
  0x47   :  { %v529_v33 = vld [vmem:[#allocation2 + $0x2a0] sm:$0xff]  ;;  %v535_v34 = vld [vmem:[#allocation2 + $0x2a8] sm:$0xff]  ;;  %v541_v35 = vld [vmem:[#allocation2 + $0x2b0] sm:$0xff]  ;;  %v1436_v40 = vadd.f32 %v1644_v28, %v2054_v53  ;;  %v1437_v41 = vadd.f32 %v1645_v29, %v2056_v54  ;;  %1525 = vst [vmem:[#allocation5 + $0x1f8] sm:$0xff] %v1429_v21 }
  0x48   :  { %v1646_v36 = vld [vmem:[%s2235_s0 + $0x240] sm:$0xff]  ;;  %v1647_v37 = vld [vmem:[%s2235_s0 + $0x248] sm:$0xff]  ;;  %v1648_v38 = vld [vmem:[%s2235_s0 + $0x250] sm:$0xff]  ;;  %1526 = vst [vmem:[#allocation5 + $0x200] sm:$0xff] %v1430_v22 }
  0x49   :  { %1527 = vst [vmem:[#allocation5 + $0x208] sm:$0xff] %v1431_v23  ;;  %v547_v42 = vld [vmem:[#allocation2 + $0x2b8] sm:$0xff]  ;;  %v553_v43 = vld [vmem:[#allocation2 + $0x2c0] sm:$0xff]  ;;  %v559_v44 = vld [vmem:[#allocation2 + $0x2c8] sm:$0xff]  ;;  %v1438_v48 = vadd.f32 %v1646_v36, %v2070_v61  ;;  %v1439_v49 = vadd.f32 %v1647_v37, %v2072_v62  ;;  %v1440_v50 = vadd.f32 %v1648_v38, %v2074_v63 }
  0x4a   :  { %v1649_v45 = vld [vmem:[%s2235_s0 + $0x258] sm:$0xff]  ;;  %v1650_v46 = vld [vmem:[%s2235_s0 + $0x260] sm:$0xff]  ;;  %v1651_v47 = vld [vmem:[%s2235_s0 + $0x268] sm:$0xff]  ;;  %1528 = vst [vmem:[#allocation5 + $0x210] sm:$0xff] %v1432_v30 }
  0x4b   :  { %1529 = vst [vmem:[#allocation5 + $0x218] sm:$0xff] %v1433_v31  ;;  %1530 = vst [vmem:[#allocation5 + $0x220] sm:$0xff] %v1434_v32  ;;  %v565_v51 = vld [vmem:[#allocation2 + $0x2d0] sm:$0xff]  ;;  %v571_v52 = vld [vmem:[#allocation2 + $0x2d8] sm:$0xff]  ;;  %v1441_v57 = vadd.f32 %v1649_v45, %v2088_v6  ;;  %v1442_v58 = vadd.f32 %v1650_v46, %v2090_v7  ;;  %v1443_v59 = vadd.f32 %v1651_v47, %v2092_v8 }
  0x4c   :  { %v577_v53 = vld [vmem:[#allocation2 + $0x2e0] sm:$0xff]  ;;  %v1652_v54 = vld [vmem:[%s2235_s0 + $0x270] sm:$0xff]  ;;  %v1653_v55 = vld [vmem:[%s2235_s0 + $0x278] sm:$0xff]  ;;  %1531 = vst [vmem:[#allocation5 + $0x228] sm:$0xff] %v1435_v39 }
  0x4d   :  { %v1654_v56 = vld [vmem:[%s2235_s0 + $0x280] sm:$0xff]  ;;  %1532 = vst [vmem:[#allocation5 + $0x230] sm:$0xff] %v1436_v40  ;;  %1533 = vst [vmem:[#allocation5 + $0x238] sm:$0xff] %v1437_v41  ;;  %v583_v60 = vld [vmem:[#allocation2 + $0x2e8] sm:$0xff]  ;;  %v1444_v2 = vadd.f32 %v1652_v54, %v2106_v15  ;;  %v1445_v3 = vadd.f32 %v1653_v55, %v2108_v16 }
  0x4e   :  { %v589_v61 = vld [vmem:[#allocation2 + $0x2f0] sm:$0xff]  ;;  %v595_v62 = vld [vmem:[#allocation2 + $0x2f8] sm:$0xff]  ;;  %v1655_v63 = vld [vmem:[%s2235_s0 + $0x288] sm:$0xff]  ;;  %v1446_v4 = vadd.f32 %v1654_v56, %v2110_v17  ;;  %1534 = vst [vmem:[#allocation5 + $0x240] sm:$0xff] %v1438_v48 }
  0x4f   :  { %v1656_v0 = vld [vmem:[%s2235_s0 + $0x290] sm:$0xff]  ;;  %v1657_v1 = vld [vmem:[%s2235_s0 + $0x298] sm:$0xff]  ;;  %1535 = vst [vmem:[#allocation5 + $0x248] sm:$0xff] %v1439_v49  ;;  %1536 = vst [vmem:[#allocation5 + $0x250] sm:$0xff] %v1440_v50  ;;  %v1447_v8 = vadd.f32 %v1655_v63, %v2124_v24 }
  0x50   :  { %v1658_v5 = vld [vmem:[%s2235_s0 + $0x2a0] sm:$0xff]  ;;  %v1659_v6 = vld [vmem:[%s2235_s0 + $0x2a8] sm:$0xff]  ;;  %v1660_v7 = vld [vmem:[%s2235_s0 + $0x2b0] sm:$0xff]  ;;  %v1448_v9 = vadd.f32 %v1656_v0, %v2126_v25  ;;  %v1449_v10 = vadd.f32 %v1657_v1, %v2128_v26  ;;  %1537 = vst [vmem:[#allocation5 + $0x258] sm:$0xff] %v1441_v57 }
  0x51   :  { %1538 = vst [vmem:[#allocation5 + $0x260] sm:$0xff] %v1442_v58  ;;  %1539 = vst [vmem:[#allocation5 + $0x268] sm:$0xff] %v1443_v59  ;;  %v1661_v11 = vld [vmem:[%s2235_s0 + $0x2b8] sm:$0xff]  ;;  %v1662_v12 = vld [vmem:[%s2235_s0 + $0x2c0] sm:$0xff]  ;;  %v1450_v14 = vadd.f32 %v1658_v5, %v529_v33  ;;  %v1451_v15 = vadd.f32 %v1659_v6, %v535_v34  ;;  %v1452_v16 = vadd.f32 %v1660_v7, %v541_v35 }
  0x52   :  { %v1663_v13 = vld [vmem:[%s2235_s0 + $0x2c8] sm:$0xff]  ;;  %1540 = vst [vmem:[#allocation5 + $0x270] sm:$0xff] %v1444_v2  ;;  %1541 = vst [vmem:[#allocation5 + $0x278] sm:$0xff] %v1445_v3  ;;  %v1664_v17 = vld [vmem:[%s2235_s0 + $0x2d0] sm:$0xff]  ;;  %v1453_v20 = vadd.f32 %v1661_v11, %v547_v42  ;;  %v1454_v21 = vadd.f32 %v1662_v12, %v553_v43 }
  0x53   :  { %1542 = vst [vmem:[#allocation5 + $0x280] sm:$0xff] %v1446_v4  ;;  %v1665_v18 = vld [vmem:[%s2235_s0 + $0x2d8] sm:$0xff]  ;;  %v1666_v19 = vld [vmem:[%s2235_s0 + $0x2e0] sm:$0xff]  ;;  %v1455_v22 = vadd.f32 %v1663_v13, %v559_v44  ;;  %1543 = vst [vmem:[#allocation5 + $0x288] sm:$0xff] %v1447_v8  ;;  %v1456_v26 = vadd.f32 %v1664_v17, %v565_v51 }
  0x54   :  { %1544 = vst [vmem:[#allocation5 + $0x290] sm:$0xff] %v1448_v9  ;;  %1545 = vst [vmem:[#allocation5 + $0x298] sm:$0xff] %v1449_v10  ;;  %v1667_v23 = vld [vmem:[%s2235_s0 + $0x2e8] sm:$0xff]  ;;  %v1668_v24 = vld [vmem:[%s2235_s0 + $0x2f0] sm:$0xff]  ;;  %v1457_v27 = vadd.f32 %v1665_v18, %v571_v52  ;;  %v1458_v28 = vadd.f32 %v1666_v19, %v577_v53 }
  0x55   :  { %v1669_v25 = vld [vmem:[%s2235_s0 + $0x2f8] sm:$0xff]  ;;  %1546 = vst [vmem:[#allocation5 + $0x2a0] sm:$0xff] %v1450_v14  ;;  %1547 = vst [vmem:[#allocation5 + $0x2a8] sm:$0xff] %v1451_v15  ;;  %v1459_v29 = vadd.f32 %v1667_v23, %v583_v60  ;;  %v1460_v30 = vadd.f32 %v1668_v24, %v589_v61  ;;  %s1694_s0 = scalar_lea.vmem %s1564_s6, 12288 }
  0x56   :  { %1548 = vst [vmem:[#allocation5 + $0x2b0] sm:$0xff] %v1452_v16  ;;  %v1461_v31 = vadd.f32 %v1669_v25, %v595_v62  ;;  %1549 = vst [vmem:[#allocation5 + $0x2b8] sm:$0xff] %v1453_v20  ;;  %p1695_p5 = scmp.ne.s32.totalorder %s1564_s6, %s1694_s0  ;;  %p1700_p7 = scmp.lt.s32.totalorder %s1694_s0, %s1694_s0 }
  0x57   :  { %1550 = vst [vmem:[#allocation5 + $0x2c0] sm:$0xff] %v1454_v21  ;;  %1551 = vst [vmem:[#allocation5 + $0x2c8] sm:$0xff] %v1455_v22 }
  0x58   :  { %1552 = vst [vmem:[#allocation5 + $0x2d0] sm:$0xff] %v1456_v26  ;;  %1553 = vst [vmem:[#allocation5 + $0x2d8] sm:$0xff] %v1457_v27  ;;  %p1701_p8 = por %p1700_p7, %p1699_p6 }
  0x59   :  { %1554 = vst [vmem:[#allocation5 + $0x2e0] sm:$0xff] %v1458_v28  ;;  %1555 = vst [vmem:[#allocation5 + $0x2e8] sm:$0xff] %v1459_v29 }
  0x5a   :  { %1556 = vst [vmem:[#allocation5 + $0x2f0] sm:$0xff] %v1460_v30  ;;  %1557 = vst [vmem:[#allocation5 + $0x2f8] sm:$0xff] %v1461_v31  ;;  %p1702_p9 = pnand %p1701_p8, %p1695_p5 }
  0x5c   :  { %1705 = shalt.err (!%p1702_p9)
}
  0x5d   :  { %1569 = dma.vmem_to_hbm [thread:$0]  %s1564_s6, 12288, %s2237_s2, [#allocation4], %s1719_s12, %s1719_s12, %s1720_s13  }
  0x5e   :  { %1716 = dma.done.wait [#allocation4], 12288  }
  0x5f   :  { %1717 = vsyncadd [#allocation4], 4294955008 }
  0x60   :  { %1573 = vsyncpa [#allocation3], 1 }
  0x61   :  { %1574 = vsyncpa [#allocation4], 1 }

</bundles_post_ra>
